<compile_context>
chip_gen: v7x
topology: tpu7x:2x2x1
jax: 0.10.0
libtpu: 0.0.40
codegen_flags: <defaults>
</compile_context>

<pallas_src>
import functools

import jax
import jax.numpy as jnp
from jax.experimental import pallas as pl
from jax.experimental.pallas import tpu as pltpu


# ---------------------------------------------------------------------------
# VMEM budget (generation aware).
# ---------------------------------------------------------------------------
def _vmem_capacity_bytes():
    try:
        info = pltpu.get_tpu_info()
        cap = getattr(info, "vmem_capacity_bytes", None)
        if cap:
            return int(cap)
    except Exception:
        pass
    return 64 * 1024 * 1024  # conservative default (v7x per-TC capacity)


def _vmem_budget():
    cap = _vmem_capacity_bytes()
    if cap >= 96 * 1024 * 1024:
        # v5e / v6e: 128 MiB physical VMEM -> be aggressive, keep headroom.
        return 96 * 1024 * 1024
    # v7x: 64 MiB per TensorCore -> stay well below physical.
    return min(max(cap - 16 * 1024 * 1024, 16 * 1024 * 1024), 48 * 1024 * 1024)


def _padded_block_bytes(nb, c, hw, itemsize):
    """Bytes of one (nb, c, hw) block after (8, 128) layout padding."""
    c_pad = ((c + 7) // 8) * 8
    hw_pad = ((hw + 127) // 128) * 128
    return nb * c_pad * hw_pad * itemsize


def _pick_batch_block(n, item_bytes, target_bytes):
    """Largest divisor NB of n with NB*item_bytes <= target, keeping the grid
    length >= 2 (so double-buffering / megacore sharding still apply)."""
    best = 1
    for nb in range(1, n + 1):
        if n % nb != 0:
            continue
        if n > 1 and n // nb < 2:
            continue
        if nb * item_bytes <= target_bytes:
            best = max(best, nb)
    return best


# ---------------------------------------------------------------------------
# Fused single-pass kernel: block = (NB, C, HW), one grid step per NB batch
# elements.
# ---------------------------------------------------------------------------
def _fused_kernel(x_ref, w1_ref, w2_ref, o_ref, *, inv_hw):
    # x_ref / o_ref: (NB, C, HW)   w1_ref: (Cr, C)   w2_ref: (C, Cr)
    # Global average pool: f32 accumulation without materializing an f32 copy.
    pooled = jnp.sum(x_ref[...], axis=-1, dtype=jnp.float32) * inv_hw      # (NB, C)

    # Batched 1x1-conv FCs across the NB batch elements (A @ B^T form -> MXU
    # native lhs/rhs-transposed matmul, no per-element GEMVs).
    w1 = w1_ref[...].astype(jnp.float32)                                    # (Cr, C)
    w2 = w2_ref[...].astype(jnp.float32)                                    # (C, Cr)
    y1 = jnp.maximum(
        jnp.einsum("nc,rc->nr", pooled, w1,
                   preferred_element_type=jnp.float32), 0.0)                # (NB, Cr)
    y2 = jnp.einsum("nr,cr->nc", y1, w2,
                    preferred_element_type=jnp.float32)                     # (NB, C)
    s = jnp.clip(y2 + 3.0, 0.0, 6.0) * (1.0 / 6.0)                          # (NB, C)

    # Re-stream x from VMEM (do not hold the full block live across the FCs),
    # multiply in f32 (matches reference), cast only at the store.
    o_ref[...] = (x_ref[...] * s[:, :, None]).astype(o_ref.dtype)


def _se_fused(x, w1, w2, *, nb, vmem_limit):
    N, C, HW = x.shape
    Cr = w1.shape[0]
    grid_n = N // nb
    return pl.pallas_call(
        functools.partial(_fused_kernel, inv_hw=1.0 / HW),
        out_shape=jax.ShapeDtypeStruct((N, C, HW), x.dtype),
        grid_spec=pltpu.PrefetchScalarGridSpec(
            num_scalar_prefetch=0,
            grid=(grid_n,),
            in_specs=[
                pl.BlockSpec((nb, C, HW), lambda g: (g, 0, 0)),
                pl.BlockSpec((Cr, C), lambda g: (0, 0)),
                pl.BlockSpec((C, Cr), lambda g: (0, 0)),
            ],
            out_specs=pl.BlockSpec((nb, C, HW), lambda g: (g, 0, 0)),
        ),
        compiler_params=pltpu.CompilerParams(
            dimension_semantics=("parallel",),
            vmem_limit_bytes=int(vmem_limit)),
    )(x, w1, w2)


# ---------------------------------------------------------------------------
# Two-pass path: spatially tiled pooled-sum reduction, FC/hsigmoid for all N
# as one batched matmul in the wrapper, then a fully parallel scale pass.
# ---------------------------------------------------------------------------
def _pool_sum_kernel(x_ref, sum_ref, acc_ref, *, hw, tile):
    # x_ref: (C, T)   sum_ref / acc_ref: (C, 1)
    t = pl.program_id(1)

    @pl.when(t == 0)
    def _():
        acc_ref[...] = jnp.zeros_like(acc_ref)

    x = x_ref[...]
    if hw % tile != 0:
        # cdiv grid: mask out-of-bounds lanes in the padded tail tile.
        lane = jax.lax.broadcasted_iota(jnp.int32, x.shape, x.ndim - 1)
        x = jnp.where(lane + t * tile < hw, x, jnp.zeros_like(x))
    acc_ref[...] += jnp.sum(x, axis=-1, keepdims=True, dtype=jnp.float32)

    @pl.when(t == pl.num_programs(1) - 1)
    def _():
        sum_ref[...] = acc_ref[...]


def _apply_kernel(x_ref, s_ref, o_ref):
    # x_ref / o_ref: (C, T)   s_ref: (C, 1) f32
    o_ref[...] = (x_ref[...] * s_ref[...]).astype(o_ref.dtype)


def _pick_tile(hw, max_tile):
    """Lane-dense spatial tile: full HW if it fits; else the largest
    multiple-of-128 divisor of HW <= max_tile (exact tiling); else a
    multiple-of-128 tile with a masked tail (cdiv grid)."""
    if hw <= max_tile:
        return hw
    cap = max((max_tile // 128) * 128, 128)
    for t in range(cap, 127, -128):
        if hw % t == 0:
            return t
    return cap


def _se_two_pass(x, w1, w2, *, max_tile, vmem_limit):
    N, C, HW = x.shape
    T = _pick_tile(HW, max_tile)
    num_t = -(-HW // T)

    # Pass 1: per-(n, c) pooled sums only (weights kept out of the streamed
    # reduction pipeline).
    sums = pl.pallas_call(
        functools.partial(_pool_sum_kernel, hw=HW, tile=T),
        out_shape=jax.ShapeDtypeStruct((N, C, 1), jnp.float32),
        grid_spec=pltpu.PrefetchScalarGridSpec(
            num_scalar_prefetch=0,
            grid=(N, num_t),
            in_specs=[pl.BlockSpec((pl.Squeezed(), C, T),
                                   lambda n, t: (n, 0, t))],
            out_specs=pl.BlockSpec((pl.Squeezed(), C, 1),
                                   lambda n, t: (n, 0, 0)),
            scratch_shapes=[pltpu.VMEM((C, 1), jnp.float32)],
        ),
        compiler_params=pltpu.CompilerParams(
            dimension_semantics=("parallel", "arbitrary"),
            vmem_limit_bytes=int(vmem_limit)),
    )(x)

    # Tiny FC + hsigmoid for all N at once (one batched matmul pair; off the
    # per-spatial-tile critical path).
    pooled = sums[:, :, 0] * (1.0 / HW)                               # (N, C) f32
    y1 = jnp.maximum(pooled @ w1.astype(jnp.float32).T, 0.0)          # (N, Cr)
    y2 = y1 @ w2.astype(jnp.float32).T                                # (N, C)
    s = (jnp.clip(y2 + 3.0, 0.0, 6.0) * (1.0 / 6.0))[:, :, None]      # (N, C, 1)

    # Pass 2: out = x * s, fully parallel streaming pass (OOB tail stores are
    # dropped by Pallas, so no mask needed here).
    out = pl.pallas_call(
        _apply_kernel,
        out_shape=jax.ShapeDtypeStruct((N, C, HW), x.dtype),
        grid_spec=pltpu.PrefetchScalarGridSpec(
            num_scalar_prefetch=0,
            grid=(N, num_t),
            in_specs=[
                pl.BlockSpec((pl.Squeezed(), C, T), lambda n, t: (n, 0, t)),
                pl.BlockSpec((pl.Squeezed(), C, 1), lambda n, t: (n, 0, 0)),
            ],
            out_specs=pl.BlockSpec((pl.Squeezed(), C, T),
                                   lambda n, t: (n, 0, t)),
        ),
        compiler_params=pltpu.CompilerParams(
            dimension_semantics=("parallel", "parallel"),
            vmem_limit_bytes=int(vmem_limit)),
    )(x, s)
    return out


# ---------------------------------------------------------------------------
# Public wrapper: matches PyTorch SeModule.forward on NCHW inputs.
# ---------------------------------------------------------------------------
def se_module(x_nchw, w1, w2, *, path="auto", max_tile=4096,
              batch_block_target_bytes=2 * 1024 * 1024):
    """x_nchw: (N, C, H, W); w1: (Cr, C); w2: (C, Cr). Returns (N, C, H, W)."""
    N, C, H, W = x_nchw.shape
    HW = H * W

    # Free reshape: NCHW is already (N, C, H*W)-contiguous. No transposes.
    x = x_nchw.reshape(N, C, HW)

    budget = _vmem_budget()
    item_bytes = _padded_block_bytes(1, C, HW, x.dtype.itemsize)
    weight_bytes = 2 * (w1.size + w2.size) * 4  # double-buffered, tiny

    if path == "auto":
        # Fused path VMEM: 2x double-buffered (in + out) blocks + weights.
        fused_fits = 4 * item_bytes + weight_bytes <= budget
        # Megacore (v7x): a length-1 fused grid cannot shard across the two
        # TensorCores; prefer the tiled two-pass path when there is enough
        # spatial extent to make a deep parallel grid.
        prefer_two_pass = (N == 1 and HW >= 8 * 128)
        path = "fused" if (fused_fits and not prefer_two_pass) else "two_pass"

    if path == "fused":
        target = min(batch_block_target_bytes, max(budget // 8, item_bytes))
        nb = _pick_batch_block(N, item_bytes, target)
        out = _se_fused(x, w1, w2, nb=nb, vmem_limit=budget)
    else:
        # TODO(synk): for HW < 128 layers a (N, C*HW) lane-dense repack with a
        # segmented pooling reduce would further improve lane utilization.
        out = _se_two_pass(x, w1, w2, max_tile=max_tile, vmem_limit=budget)

    return out.reshape(N, C, H, W)


def se_module_ref(x, w1, w2):
    """Pure-JAX reference matching the PyTorch forward."""
    pooled = jnp.mean(x, axis=(2, 3))                       # (N, C)
    y1 = jnp.maximum(pooled @ w1.T, 0.0)                    # (N, Cr)
    y2 = y1 @ w2.T                                          # (N, C)
    s = jnp.clip(y2 + 3.0, 0.0, 6.0) / 6.0
    return x * s[:, :, None, None]


if __name__ == "__main__":
    N, C, H, W = 2, 16, 16, 16
    reduction = 4
    Cr = C // reduction

    key = jax.random.PRNGKey(0)
    kx, k1, k2, kx2 = jax.random.split(key, 4)
    x = jax.random.normal(kx, (N, C, H, W), dtype=jnp.float32)
    # 1x1 conv weights (bias=False); deterministic init from PRNGKey(0).
    w1 = 0.1 * jax.random.normal(k1, (Cr, C), dtype=jnp.float32)  # Conv2d(C -> Cr)
    w2 = 0.1 * jax.random.normal(k2, (C, Cr), dtype=jnp.float32)  # Conv2d(Cr -> C)

    ref = se_module_ref(x, w1, w2)

    # Default path: fused single-pass kernel (NB-batched, small maps fit VMEM).
    out_fused = jax.block_until_ready(se_module(x, w1, w2))
    assert jnp.allclose(out_fused, ref, atol=1e-5, rtol=1e-5), \
        "fused kernel mismatch vs reference"

    # Exercise the spatially-tiled two-pass path (exact 128-divisor tiling).
    out_tiled = jax.block_until_ready(
        se_module(x, w1, w2, path="two_pass", max_tile=128))
    assert jnp.allclose(out_tiled, ref, atol=1e-5, rtol=1e-5), \
        "two-pass kernel mismatch vs reference"

    # Exercise the masked-tail tiling (HW = 18*18 = 324, not a multiple of 128).
    x2 = jax.random.normal(kx2, (1, C, 18, 18), dtype=jnp.float32)
    ref2 = se_module_ref(x2, w1, w2)
    out_masked = jax.block_until_ready(
        se_module(x2, w1, w2, path="two_pass", max_tile=128))
    assert jnp.allclose(out_masked, ref2, atol=1e-5, rtol=1e-5), \
        "masked-tail two-pass kernel mismatch vs reference"

    print("KERNEL_OK")
</pallas_src>

<mosaic_0001>
module attributes {stable_mosaic.version = 11 : i64} {
  func.func @_fused_kernel(%arg0: i32, %arg1: memref<1x16x256xf32, #tpu.memory_space<vmem>>, %arg2: memref<4x16xf32, #tpu.memory_space<vmem>>, %arg3: memref<16x4xf32, #tpu.memory_space<vmem>>, %arg4: memref<1x16x256xf32, #tpu.memory_space<vmem>>) attributes {dimension_semantics = [#tpu.dimension_semantics<parallel>], iteration_bounds = array<i64: 2>, scalar_prefetch = 0 : i64, scratch_operands = 0 : i64, tpu.core_type = #tpu.core_type<tc>, window_params = [{transform_indices = @transform_0, window_bounds = array<i64: 1, 16, 256>}, {pipeline_mode = #tpu.pipeline_mode<synchronous>, transform_indices = @transform_1, window_bounds = array<i64: 4, 16>}, {pipeline_mode = #tpu.pipeline_mode<synchronous>, transform_indices = @transform_2, window_bounds = array<i64: 16, 4>}, {transform_indices = @transform_3, window_bounds = array<i64: 1, 16, 256>}]} {
    %c0 = arith.constant 0 : index
    %c0_0 = arith.constant 0 : index
    %c0_1 = arith.constant 0 : index
    %0 = vector.load %arg1[%c0, %c0_0, %c0_1] : memref<1x16x256xf32, #tpu.memory_space<vmem>>, vector<1x16x256xf32>
    %cst = arith.constant dense<0.000000e+00> : vector<1x16xf32>
    %1 = vector.multi_reduction <add>, %0, %cst [2] : vector<1x16x256xf32> to vector<1x16xf32>
    %cst_2 = arith.constant 3.906250e-03 : f32
    %2 = vector.broadcast %cst_2 : f32 to vector<1x16xf32>
    %3 = arith.mulf %1, %2 : vector<1x16xf32>
    %c0_3 = arith.constant 0 : index
    %c0_4 = arith.constant 0 : index
    %4 = vector.load %arg2[%c0_3, %c0_4] : memref<4x16xf32, #tpu.memory_space<vmem>>, vector<4x16xf32>
    %c0_5 = arith.constant 0 : index
    %c0_6 = arith.constant 0 : index
    %5 = vector.load %arg3[%c0_5, %c0_6] : memref<16x4xf32, #tpu.memory_space<vmem>>, vector<16x4xf32>
    "tpu.trace_start"() <{level = 10 : i32, message = "nc,rc->nr"}> : () -> ()
    %cst_7 = arith.constant dense<0.000000e+00> : vector<1x4xf32>
    %6 = tpu.matmul %3, %4, %cst_7 {dimension_numbers = #tpu.dot_dimension_numbers<[1], [1], [0], [0], [0, 0, 1, 0], [], []>} : vector<1x16xf32>, vector<4x16xf32>, vector<1x4xf32> -> vector<1x4xf32>
    "tpu.trace_stop"() : () -> ()
    %cst_8 = arith.constant 0.000000e+00 : f32
    %7 = vector.broadcast %cst_8 : f32 to vector<1x4xf32>
    %8 = arith.maximumf %6, %7 : vector<1x4xf32>
    "tpu.trace_start"() <{level = 10 : i32, message = "nr,cr->nc"}> : () -> ()
    %cst_9 = arith.constant dense<0.000000e+00> : vector<1x16xf32>
    %9 = tpu.matmul %8, %5, %cst_9 {dimension_numbers = #tpu.dot_dimension_numbers<[1], [1], [0], [0], [0, 0, 1, 0], [], []>} : vector<1x4xf32>, vector<16x4xf32>, vector<1x16xf32> -> vector<1x16xf32>
    "tpu.trace_stop"() : () -> ()
    %cst_10 = arith.constant 3.000000e+00 : f32
    %10 = vector.broadcast %cst_10 : f32 to vector<1x16xf32>
    %11 = arith.addf %9, %10 : vector<1x16xf32>
    %cst_11 = arith.constant 0.000000e+00 : f32
    %cst_12 = arith.constant 6.000000e+00 : f32
    %12 = vector.broadcast %cst_11 : f32 to vector<1x16xf32>
    %13 = arith.maximumf %12, %11 : vector<1x16xf32>
    %14 = vector.broadcast %cst_12 : f32 to vector<1x16xf32>
    %15 = arith.minimumf %14, %13 : vector<1x16xf32>
    %cst_13 = arith.constant 0.166666672 : f32
    %16 = vector.broadcast %cst_13 : f32 to vector<1x16xf32>
    %17 = arith.mulf %15, %16 : vector<1x16xf32>
    %c0_14 = arith.constant 0 : index
    %c0_15 = arith.constant 0 : index
    %c0_16 = arith.constant 0 : index
    %18 = vector.load %arg1[%c0_14, %c0_15, %c0_16] : memref<1x16x256xf32, #tpu.memory_space<vmem>>, vector<1x16x256xf32>
    %19 = vector.shape_cast %17 : vector<1x16xf32> to vector<1x16x1xf32>
    %20 = vector.broadcast %19 : vector<1x16x1xf32> to vector<1x16x256xf32>
    %21 = arith.mulf %18, %20 : vector<1x16x256xf32>
    %c0_17 = arith.constant 0 : index
    %c0_18 = arith.constant 0 : index
    %c0_19 = arith.constant 0 : index
    %22 = vector.load %arg4[%c0_17, %c0_18, %c0_19] : memref<1x16x256xf32, #tpu.memory_space<vmem>>, vector<1x16x256xf32>
    tpu.vector_store %arg4[%c0_17, %c0_18, %c0_19], %21 {strides = array<i32>} : memref<1x16x256xf32, #tpu.memory_space<vmem>>, vector<1x16x256xf32>,
    return
  }
  func.func @transform_0(%arg0: i32) -> (i32, i32, i32) {
    %c0_i32 = arith.constant 0 : i32
    %c0_i32_0 = arith.constant 0 : i32
    %c0_i32_1 = arith.constant 0 : i32
    return %arg0, %c0_i32, %c0_i32_0 : i32, i32, i32
  }
  func.func @transform_1(%arg0: i32) -> (i32, i32) {
    %c0_i32 = arith.constant 0 : i32
    %c0_i32_0 = arith.constant 0 : i32
    %c0_i32_1 = arith.constant 0 : i32
    return %c0_i32, %c0_i32_0 : i32, i32
  }
  func.func @transform_2(%arg0: i32) -> (i32, i32) {
    %c0_i32 = arith.constant 0 : i32
    %c0_i32_0 = arith.constant 0 : i32
    %c0_i32_1 = arith.constant 0 : i32
    return %c0_i32, %c0_i32_0 : i32, i32
  }
  func.func @transform_3(%arg0: i32) -> (i32, i32, i32) {
    %c0_i32 = arith.constant 0 : i32
    %c0_i32_0 = arith.constant 0 : i32
    %c0_i32_1 = arith.constant 0 : i32
    return %arg0, %c0_i32, %c0_i32_0 : i32, i32, i32
  }
}

</mosaic_0001>

<bundles_post_ra>
// kernel: tpu_custom_call.1
= control target key start
LH: loop header
LB: loop body
LE: loop exit
PB: predicated region body
PF: predicated region fallthrough
CT: control target
= control target key end

     0   :  { %8 = vsyncpa [#allocation3], 0  ;;  %s891_s0 = inlined_call_operand.hbm [shape: f32[2,16,256], index: 0, kind: input, shape index: {}]   ;;  %s892_s1 = inlined_call_operand.vmem [shape: f32[4,16], index: 1, kind: input, shape index: {}]   ;;  %s893_s2 = inlined_call_operand.vmem [shape: f32[16,4], index: 2, kind: input, shape index: {}]   ;;  %s894_s3 = inlined_call_operand.hbm [shape: f32[2,16,256], index: 3, kind: output, shape index: {}]  }
   0x1   :  { %10 = vsyncpa [#allocation3 + $0x1], 0 }
   0x2   :  { %11 = vsyncpa [#allocation4], 0 }
   0x3   :  { %13 = vsyncpa [#allocation4 + $0x1], 0  ;;  %s711_s12 = smov 0   ;;  %s713_s13 = smov 0  }
   0x4   :  { %s715_s14 = smov 0   ;;  %s717_s15 = smov 0  }
   0x5 LB: > { %s732_s16 = sadd.s32 4294967295, %s680_s15   ;;  %s489_s17 = sadd.s32 4294967294, %s680_s15   ;;  %s680_s15 = sphi %s717_s15, %s907_s15   ;;  %s676_s14 = sphi %s715_s14, %s906_s14   ;;  %s672_s13 = sphi %s713_s13, %s905_s13   ;;  %s668_s12 = sphi %s711_s12, %s904_s12  }
   0x6   : > { %s736_s18 = sadd.s32 1, %s680_s15   ;;  %s26_s19 = sadd.s32 1, %s676_s14 }
   0x7   : > { %s23_s20 = ssub.s32 %s680_s15, %s736_s18  ;;  %p33_p0 = scmp.ne.s32.totalorder %s676_s14, %s672_s13 }
   0x8   : > { %p24_p1 = scmp.eq.s32.totalorder %s23_s20, 0  ;;  %p34_p2 = scmp.eq.s32.totalorder %s680_s15, 0 }
   0x9   : > { %p39_p3 = scmp.ne.s32.totalorder %s672_s13, %s668_s12  ;;  %p40_p4 = scmp.eq.s32.totalorder %s732_s16, 0 }
   0xa   : > { %s748_s21 = scalar_select %p24_p1, %s676_s14, %s26_s19  }
   0xb   : > { %p750_p5 = por %p34_p2, %p33_p0  ;;  %p754_p6 = por %p40_p4, %p39_p3 }
   0xc   : > { %p105_p7 = scmp.eq.s32.totalorder %s732_s16, 1  ;;  %p111_p8 = scmp.eq.s32.totalorder %s489_s17, 1 }
   0xd   : > { %p543_p10 = scmp.lt.s32.totalorder %s680_s15, 2  ;;  %s137_s26 = sand.u32 1, %s676_s14  }
   0xe   : > { %p761_p11 = por %p105_p7, %p33_p0  ;;  %p765_p12 = por %p111_p8, %p39_p3 }
   0xf   : > { %s508_s27 = sshll.u32 %s680_s15, 9  ;;  %s492_s28 = sshll.u32 %s137_s26, 5 }
  0x10   : > { %s898_s24 = scalar_select %p761_p11, 1, 0 }
  0x11   : > { %s899_s25 = scalar_select %p765_p12, 1, 0 }
  0x12   : > { %s774_s4 = scalar_lea.hbm %s891_s0, %s508_s27  ;;  %s141_s5 = scalar_lea.vmem [#allocation2], %s492_s28 }
  0x13   : > { %s148_s6 = sshll.u32 %s141_s5, 4  ;;  %p778_p13 = pnand %p543_p10, %p750_p5  ;;  %s782_s6 = int_to_ptr.vmem [resolvable:$true] %s148_s6 }
  0x14   : > { %s784_s8 = scalar_lea.sflag [#allocation3], %s137_s26  ;;  %s584_s9 = scalar_lea.hbm %s774_s4, 512 }
  0x15   : > { %p585_p0 = scmp.ne.s32.totalorder %s774_s4, %s584_s9  ;;  %p586_p1 = pneg %p778_p13 }
  0x16   : > { %s589_s17 = scalar_lea.hbm %s891_s0, 1024  ;;  %p590_p4 = scmp.lt.u32.totalorder %s774_s4, %s891_s0 }
  0x17   : > { %p587_p2 = pnand %p586_p1, %p585_p0  ;;  %p591_p5 = scmp.lt.u32.totalorder %s589_s17, %s584_s9 }
  0x18   : > { %p593_p8 = scmp.lt.u32.totalorder %s584_s9, %s774_s4 }
  0x19   : > { %p588_p3 = pneg %p587_p2  ;;  %p592_p7 = por %p591_p5, %p590_p4 }
  0x1b   : > { %p594_p10 = por %p593_p8, %p592_p7 }
  0x1d   : > { %p595_p9 = pnand %p594_p10, %p588_p3 }
  0x1f   : > { %598 = shalt.err (!%p595_p9)
}
  0x20   : > { %s599_s22 = scalar_lea.vmem %s782_s6, 512  ;;  %s682_s26 = smov [#allocation2]  }
  0x21   : > { %p600_p0 = scmp.ne.s32.totalorder %s782_s6, %s599_s22  ;;  %s604_s27 = sshll.u32 %s682_s26, 4  ;;  %s605_s27 = int_to_ptr.vmem [resolvable:$false] %s604_s27 }
  0x22   : > { %s606_s28 = scalar_lea.vmem %s605_s27, 1024  ;;  %p607_p11 = scmp.lt.s32.totalorder %s782_s6, %s605_s27 }
  0x23   : > { %p602_p2 = pnand %p600_p0, %p586_p1  ;;  %p608_p4 = scmp.lt.s32.totalorder %s606_s28, %s599_s22 }
  0x25   : > { %p603_p12 = pneg %p602_p2  ;;  %p609_p5 = por %p608_p4, %p607_p11 }
  0x27   : > { %p610_p7 = pnand %p609_p5, %p603_p12 }
  0x29   : > { %613 = shalt.err (!%p610_p7)
}
  0x2a   : > { %s683_s29 = smov 256   ;;  %s684_s30 = smov 16  }
  0x2b   : > { %538 = dma.hbm_to_vmem [thread:$0]  (!%p778_p13), %s774_s4, 512, %s782_s6, %s784_s8, %s683_s29, %s683_s29, %s684_s30  }
  0x2c   : > { %p495_p9 = scmp.ge.s32.totalorder %s680_s15, 1  ;;  %p156_p1 = scmp.lt.s32.totalorder %s680_s15, 3 }
  0x2e   : > { %p157_p3 = pnand %p495_p9, %p156_p1 }
  0x2f   : > { %s815_s5 = sand.u32 (!%p157_p3), 1, %s672_s13  }
  0x30   : > { %160 = sbr.rel (%p157_p3) target bundleno = 782 (0x30e), region = 32  ;;  %s496_s9 = sshll.u32 (!%p157_p3), %s815_s5, 5 }
  0x31   : > { %s163_s10 = scalar_lea.sflag (!%p157_p3), [#allocation3], %s815_s5  ;;  %s166_s11 = scalar_lea.vmem (!%p157_p3), [#allocation2], %s496_s9 }
  0x37   : > { %659 = dma.done.wait (%p754_p6), %s163_s10, 512  }
  0x38   : > { %661 = vsyncadd (%p754_p6), %s163_s10, 4294966784  ;;  %v189_v0 = vld [vmem:[%s166_s11] sm:$0xff]  ;;  %v190_v1 = vld [vmem:[%s166_s11 + $0x8] sm:$0xff]  ;;  %v685_v6 = vmov 0.0   ;;  %vm219_vm0 = vcmask 130048   ;;  %vm686_vm1 = vmmov 0   ;;  %v206_v12 = vlaneseq }
  0x39   : > { %v191_v2 = vld [vmem:[%s166_s11 + $0x10] sm:$0xff]  ;;  %v193_v3 = vadd.f32 %v190_v1, %v189_v0  ;;  %v192_v4 = vld [vmem:[%s166_s11 + $0x18] sm:$0xff]  ;;  %515 = vmatprep.subr.mxu0 %v685_v6  ;;  %v201_v7 = vld [vmem:[%s892_s1] sm:$0xf]  ;;  %517 = vmatprep.mubr.msk.f32.mxu0 %vm686_vm1, %v685_v6  ;;  %vm296_vm2 = vcmask 31744   ;;  %v687_v10 = vmov 0.0|0.0  }
  0x3a   : > { %v196_v5 = vadd.f32 %v192_v4, %v191_v2  ;;  %516 = vmatpush3.xpose.msk.msra.mxu0 %vm219_vm0, %v201_v7  ;;  %524 = vmatprep.mubr.msk.f32.mxu1 %vm686_vm1, %v685_v6  ;;  %v202_v8 = vld [vmem:[%s893_s2] sm:$0xff]  ;;  %v203_v9 = vld [vmem:[%s893_s2 + $0x8] sm:$0xff]  ;;  %vm529_vm3 = vmpackc.low %vm296_vm2, %vm296_vm2  ;;  %v207_v13 = vand.u32 127, %v206_v12  ;;  %v209_v14 = vshrl.u32 %v206_v12, 7  ;;  %vm217_vm4 = vcmask 130112   ;;  %s188_s19 = scalar_lea.vmem [#allocation5], %s496_s9 }
  0x3b   : > { %194 = vadd.xlane.f32.xlu0 %v193_v3  ;;  %527 = vmatprep.subr.bf16.mxu1 %v687_v10  ;;  %v528_v11 = vpack.c.bf16 %v203_v9, %v202_v8  ;;  %s416_s20 = sshll.u32 %s188_s19, 4  ;;  %s509_s22 = sshll.u32 %s732_s16, 9  ;;  %s842_s20 = int_to_ptr.vmem [resolvable:$true] %s416_s20 }
  0x3c   : > { %v212_v15 = vadd.s32 4294967288, %v207_v13  ;;  %v210_v17 = vsub.s32 %v207_v13, %v209_v14  ;;  %v385_v33 = vsub.s32 0, %v209_v14  ;;  %s847_s28 = scalar_lea.hbm %s894_s3, %s509_s22  ;;  %s403_s29 = scalar_lea.sflag [#allocation4], %s815_s5 }
  0x3d   : > { %530 = vmatpush3.bf16.xpose.msk.msra.mxu1 %vm529_vm3, %v528_v11  ;;  %s614_s30 = scalar_lea.vmem %s842_s20, 512  ;;  %p901_p11 = scmp.ne.s32.totalorder %s898_s24, 0 }
  0x3e   : > { %v215_v19 = vsub.s32 %v212_v15, %v209_v14  ;;  %p615_p6 = scmp.ne.s32.totalorder %s842_s20, %s614_s30  ;;  %s688_s16 = smov [#allocation5]  }
  0x3f   : > { %197 = vadd.xlane.f32.xlu0 %v196_v5  ;;  %s618_s9 = sshll.u32 %s688_s16, 4  ;;  %s619_s9 = int_to_ptr.vmem [resolvable:$false] %s618_s9 }
  0x40   : > { %p616_p12 = pnand %p615_p6, %p901_p11  ;;  %s620_s10 = scalar_lea.vmem %s619_s9, 1024 }
  0x41   : > { %p621_p8 = scmp.lt.s32.totalorder %s842_s20, %s619_s9  ;;  %p622_p10 = scmp.lt.s32.totalorder %s620_s10, %s614_s30 }
  0x42   : > { %p617_p13 = pneg %p616_p12 }
  0x43   : > { %p623_p0 = por %p622_p10, %p621_p8 }
  0x45   : > { %p624_p2 = pnand %p623_p0, %p617_p13 }
  0xc8   : > { %v195_v16 = vpop.xlane.xlu0 %194 }
  0xc9   : > { %v199_v18 = vmul.f32 0.00390625, %v195_v16 }
  0xcb   : > { %v211_v22 = vrot.slane %v199_v18, %v210_v17 }
  0xcc   : > { %v198_v20 = vpop.xlane.xlu0 %197 }
  0xcd   : > { %v200_v21 = vmul.f32 0.00390625, %v198_v20 }
  0xcf   : > { %v216_v23 = vrot.slane %v200_v21, %v215_v19 }
  0xd1   : > { %v218_v24 = vsel %vm217_vm4, %v216_v23, %v211_v22 }
  0xd2   : > { %518 = vmatmul.mubr.msk.f32.vlgmr.msra.gmra.mrb[0].mxu0 %vm219_vm0, %v218_v24 }
 0x1a5   : > { %v291_v25 = vpop.f32.mrb[0].mxu0 }
 0x1a6   : > { %v295_v26 = vmax.f32 %v291_v25, 0.0  ;;  %v519_v27 = vpop.f32.mrb[1].mxu0 }
 0x1a8   : > { %525 = vmatmul.mubr.msk.f32.vlgmr.msra.gmra.mrb[0].mxu1 %vm296_vm2, %v295_v26 }
 0x27b   : > { %v372_v28 = vpop.f32.mrb[0].mxu1 }
 0x27c   : > { %v373_v29 = vadd.f32 3.0, %v372_v28  ;;  %v526_v30 = vpop.f32.mrb[1].mxu1 }
 0x27e   : > { %v376_v31 = vmax.f32 %v373_v29, 0.0 }
 0x280   : > { %v377_v32 = vmin.f32 %v376_v31, 6.0 }
 0x282   : > { %v378_v34 = vmul.f32 0.16666667, %v377_v32 }
 0x284   : > { %v386_v35 = vrot.slane %v378_v34, %v385_v33 }
 0x286   : > { %388 = vbcast.lane.b32.xlu1 %v386_v35, 256 }
 0x28a   : > { %392 = vbcast.lane.b32.xlu1 %v386_v35, 264 }
 0x2f8   : > { %v389_v36 = vpop.permute.xlu1 %388 }
 0x2f9   : > { %v394_v37 = vmul.f32 %v389_v36, %v189_v0  ;;  %v395_v38 = vmul.f32 %v389_v36, %v190_v1 }
 0x2fb   : > { %398 = vst [vmem:[%s188_s19] sm:$0xff] %v394_v37  ;;  %399 = vst [vmem:[%s188_s19 + $0x8] sm:$0xff] %v395_v38 }
 0x2fc   : > { %v393_v39 = vpop.permute.xlu1 %392 }
 0x2fd   : > { %v396_v40 = vmul.f32 %v393_v39, %v191_v2  ;;  %v397_v41 = vmul.f32 %v393_v39, %v192_v4 }
 0x2ff   : > { %400 = vst [vmem:[%s188_s19 + $0x10] sm:$0xff] %v396_v40  ;;  %401 = vst [vmem:[%s188_s19 + $0x18] sm:$0xff] %v397_v41 }
 0x300   : > { %627 = shalt.err (!%p624_p2)
}
 0x301   : > { %s628_s11 = scalar_lea.hbm %s847_s28, 512  ;;  %s632_s23 = scalar_lea.hbm %s894_s3, 1024 }
 0x302   : > { %p629_p4 = scmp.ne.s32.totalorder %s847_s28, %s628_s11  ;;  %p633_p9 = scmp.lt.u32.totalorder %s847_s28, %s894_s3 }
 0x303   : > { %p634_p1 = scmp.lt.u32.totalorder %s632_s23, %s628_s11  ;;  %p636_p6 = scmp.lt.u32.totalorder %s628_s11, %s847_s28 }
 0x304   : > { %p630_p5 = pnand %p629_p4, %p901_p11 }
 0x305   : > { %p635_p3 = por %p634_p1, %p633_p9 }
 0x306   : > { %p631_p7 = pneg %p630_p5 }
 0x307   : > { %p637_p12 = por %p636_p6, %p635_p3 }
 0x309   : > { %p638_p13 = pnand %p637_p12, %p631_p7 }
 0x30b   : > { %641 = shalt.err (!%p638_p13)
}
 0x30c   : > { %s689_s17 = smov 256   ;;  %s690_s19 = smov 16  }
 0x30d   : > { %533 = dma.vmem_to_hbm [thread:$0]  (%p901_p11), %s842_s20, 512, %s847_s28, %s403_s29, %s689_s17, %s689_s17, %s690_s19  }
 0x30e PF: > { %s431_s22 = sand.u32 1, %s668_s12   ;;  %p902_p8 = scmp.ne.s32.totalorder %s899_s25, 0 }
 0x30f   : > { %p903_p10 = scmp.ge.s32.totalorder %s680_s15, 2  ;;  %s432_s26 = scalar_lea.sflag [#allocation4], %s431_s22 }
 0x311   : > { %p540_p0 = pnand %p903_p10, %p902_p8 }
 0x313   : > { %663 = dma.done.wait (!%p540_p0), %s432_s26, 512  }
 0x314   : > { %665 = vsyncadd (!%p540_p0), %s432_s26, 4294966784  ;;  %p16_p2 = scmp.ge.s32.totalorder %s736_s18, 4   ;;  %s904_s12 = smov %s672_s13 }
 0x315   : > { %s905_s13 = smov %s676_s14  ;;  %s906_s14 = smov %s748_s21 }
 0x316   : > { %s907_s15 = smov %s736_s18  ;;  %18 = sbr.rel (!%p16_p2) target bundleno = 5 (0x5), region = 77 }
 0x31d   :  { %437 = vsyncpa [#allocation3], 1 }
 0x31e   :  { %439 = vsyncpa [#allocation3 + $0x1], 1 }
 0x31f   :  { %440 = vsyncpa [#allocation4], 1 }
 0x320   :  { %442 = vsyncpa [#allocation4 + $0x1], 1 }

</bundles_post_ra>
